<compile_context>
chip_gen: v7x
topology: tpu7x:2x2x1
jax: 0.10.0
libtpu: 0.0.40
codegen_flags: <defaults>
</compile_context>

<pallas_src>
import functools

import numpy as np
import jax
import jax.numpy as jnp
from jax.experimental import pallas as pl
from jax.experimental.pallas import tpu as pltpu


# ---------------------------------------------------------------------------
# Buffer construction (plain JAX / numpy) — mirrors the PyTorch __init__
# exactly, including the float16 log(10000) quirk.
# ---------------------------------------------------------------------------
def build_pe(embedding_dim: int, max_len: int) -> jnp.ndarray:
    position = np.arange(0, max_len, dtype=np.float32)[:, None]              # (L, 1)
    log_1e4_f16 = np.float32(np.log(10000.0, dtype=np.float16))              # same quirk as torch code
    div_term = np.exp(
        np.arange(0, embedding_dim, 2, dtype=np.float32) * (-log_1e4_f16 / embedding_dim)
    )                                                                         # (D/2,)
    ang = position * div_term                                                 # (L, D/2)
    pe = np.zeros((max_len, embedding_dim), dtype=np.float32)
    pe[:, 0::2] = np.sin(ang)
    pe[:, 1::2] = np.cos(ang)
    return jnp.asarray(pe, dtype=jnp.float32)                                 # (L, D)


# ---------------------------------------------------------------------------
# Pallas kernels (pure 2-D lane-dense elementwise)
# ---------------------------------------------------------------------------
def _add_pe_kernel(x_ref, pe_ref, o_ref):
    # x block: (TS, B*D); pe block: (TS, B*D) pre-tiled across batch.
    o_ref[...] = (x_ref[...] + pe_ref[...]).astype(o_ref.dtype)


def _add_pe_dropout_kernel(x_ref, pe_ref, m_ref, o_ref):
    # m holds 0.0 (dropped) or 1/keep_prob (kept): inverted dropout.
    o_ref[...] = ((x_ref[...] + pe_ref[...]) * m_ref[...]).astype(o_ref.dtype)


# ---------------------------------------------------------------------------
# Tiling heuristic: ~1 MiB of x per grid step, rows a multiple of 8.
# ---------------------------------------------------------------------------
def _auto_tile_seq(S: int, row_bytes: int, target_block_bytes: int = 1 << 20) -> int:
    rows = (target_block_bytes // max(row_bytes, 1)) // 8 * 8
    rows = max(8, rows)
    if rows >= S:
        return S  # single full block (block dim equals full array dim -> always legal)
    return rows


# ---------------------------------------------------------------------------
# Wrapper
# ---------------------------------------------------------------------------
@functools.partial(jax.jit, static_argnames=("dropout_p", "training", "tile_seq"))
def positional_encoding_forward(
    x: jnp.ndarray,        # (S, B, D)
    pe: jnp.ndarray,       # (max_len, D)
    key: jax.Array,        # PRNG key (used only when training and dropout_p > 0)
    *,
    dropout_p: float = 0.1,
    training: bool = False,
    tile_seq: int | None = None,
) -> jnp.ndarray:
    S, B, D = x.shape
    F = B * D
    itemsize = jnp.dtype(x.dtype).itemsize

    # Lane-dense flatten; pe tiled across batch so pe2[s, b*D+d] == pe[s, d].
    x2 = x.reshape(S, F)
    pe2 = jnp.tile(pe[:S].astype(x.dtype), (1, B))

    if tile_seq is None:
        ts = _auto_tile_seq(S, F * itemsize)
    else:
        ts = min(int(tile_seq), S)
    if ts != S:
        ts = max(8, (ts // 8) * 8)  # (8,128) rule: rows multiple of 8 or full dim

    grid = (pl.cdiv(S, ts),)
    spec = pl.BlockSpec((ts, F), lambda i: (i, 0))

    use_dropout = training and dropout_p > 0.0
    if use_dropout:
        keep_prob = 1.0 - dropout_p
        keep = jax.random.bernoulli(key, keep_prob, (S, F))
        mask = keep.astype(x.dtype) * jnp.asarray(1.0 / keep_prob, dtype=x.dtype)
        kernel = _add_pe_dropout_kernel
        args = (x2, pe2, mask)
        in_specs = [spec, spec, spec]
        n_arrays = 4  # x, pe, mask, out
    else:
        kernel = _add_pe_kernel
        args = (x2, pe2)
        in_specs = [spec, spec]
        n_arrays = 3  # x, pe, out

    # Double-buffered footprint + 50% headroom; clamp to [16 MiB, 48 MiB]
    # (safe on v5e's small default scoped VMEM, well under v7x's 64 MiB).
    block_bytes = ts * F * itemsize
    vmem_limit = int(min(48 << 20, max(16 << 20, (2 * n_arrays * block_bytes * 3) // 2)))

    out2 = pl.pallas_call(
        kernel,
        out_shape=jax.ShapeDtypeStruct((S, F), x.dtype),
        grid=grid,
        in_specs=in_specs,
        out_specs=spec,
        compiler_params=pltpu.CompilerParams(
            dimension_semantics=("parallel",),
            vmem_limit_bytes=vmem_limit,
        ),
    )(*args)
    return out2.reshape(S, B, D)


# ---------------------------------------------------------------------------
# Demo / self-test
# ---------------------------------------------------------------------------
if __name__ == "__main__":
    embedding_dim = 32
    max_len = 64
    seq_len = 16
    batch = 2
    dropout_p = 0.1
    keep_prob = 1.0 - dropout_p

    key = jax.random.PRNGKey(0)
    kx, kdrop = jax.random.split(key)
    x = jax.random.normal(kx, (seq_len, batch, embedding_dim), dtype=jnp.float32)
    pe = build_pe(embedding_dim, max_len)

    ref = np.asarray(x) + np.asarray(pe)[:seq_len][:, None, :]

    # Eval mode: dropout is identity -> must match reference exactly.
    out_eval = positional_encoding_forward(x, pe, kdrop, dropout_p=dropout_p, training=False)
    out_eval = jax.block_until_ready(out_eval)
    np.testing.assert_allclose(np.asarray(out_eval), ref, rtol=1e-6, atol=1e-6)

    # Training mode: each element is either 0 (dropped) or ref/keep_prob (kept).
    out_train = positional_encoding_forward(x, pe, kdrop, dropout_p=dropout_p, training=True)
    out_train = jax.block_until_ready(out_train)
    assert out_train.shape == (seq_len, batch, embedding_dim)
    ot = np.asarray(out_train)
    scaled = ref / keep_prob
    ok = np.isclose(ot, 0.0, atol=1e-6) | np.isclose(ot, scaled, rtol=1e-5, atol=1e-6)
    assert bool(ok.all()), "training-mode output is not a valid inverted-dropout of x+pe"

    print("KERNEL_OK")
</pallas_src>

<mosaic_0001>
module attributes {stable_mosaic.version = 11 : i64} {
  func.func @_add_pe_kernel(%arg0: i32, %arg1: memref<16x64xf32, #tpu.memory_space<vmem>>, %arg2: memref<16x64xf32, #tpu.memory_space<vmem>>, %arg3: memref<16x64xf32, #tpu.memory_space<vmem>>) attributes {dimension_semantics = [#tpu.dimension_semantics<parallel>], iteration_bounds = array<i64: 1>, scalar_prefetch = 0 : i64, scratch_operands = 0 : i64, tpu.core_type = #tpu.core_type<tc>, window_params = [{transform_indices = @transform_0, window_bounds = array<i64: 16, 64>}, {transform_indices = @transform_1, window_bounds = array<i64: 16, 64>}, {transform_indices = @transform_2, window_bounds = array<i64: 16, 64>}]} {
    %c0 = arith.constant 0 : index
    %c0_0 = arith.constant 0 : index
    %0 = vector.load %arg1[%c0, %c0_0] : memref<16x64xf32, #tpu.memory_space<vmem>>, vector<16x64xf32>
    %c0_1 = arith.constant 0 : index
    %c0_2 = arith.constant 0 : index
    %1 = vector.load %arg2[%c0_1, %c0_2] : memref<16x64xf32, #tpu.memory_space<vmem>>, vector<16x64xf32>
    %2 = arith.addf %0, %1 : vector<16x64xf32>
    %c0_3 = arith.constant 0 : index
    %c0_4 = arith.constant 0 : index
    %3 = vector.load %arg3[%c0_3, %c0_4] : memref<16x64xf32, #tpu.memory_space<vmem>>, vector<16x64xf32>
    tpu.vector_store %arg3[%c0_3, %c0_4], %2 {strides = array<i32>} : memref<16x64xf32, #tpu.memory_space<vmem>>, vector<16x64xf32>,
    return
  }
  func.func @transform_0(%arg0: i32) -> (i32, i32) {
    %c0_i32 = arith.constant 0 : i32
    %c0_i32_0 = arith.constant 0 : i32
    return %arg0, %c0_i32 : i32, i32
  }
  func.func @transform_1(%arg0: i32) -> (i32, i32) {
    %c0_i32 = arith.constant 0 : i32
    %c0_i32_0 = arith.constant 0 : i32
    return %arg0, %c0_i32 : i32, i32
  }
  func.func @transform_2(%arg0: i32) -> (i32, i32) {
    %c0_i32 = arith.constant 0 : i32
    %c0_i32_0 = arith.constant 0 : i32
    return %arg0, %c0_i32 : i32, i32
  }
}

</mosaic_0001>

<bundles_post_ra>
// kernel: tile.9
= control target key start
LH: loop header
LB: loop body
LE: loop exit
PB: predicated region body
PF: predicated region fallthrough
CT: control target
= control target key end

     0   :  { %vm82_vm0 = vcmask 1047556   ;;  %vm84_vm1 = vcmask 261120   ;;  %vm103_vm2 = vcmask 523520   ;;  %s225_s0 = inlined_call_operand.vmem [shape: f32[16,2,32], index: 0, kind: input, shape index: {}]   ;;  %s226_s1 = inlined_call_operand.vmem [shape: f32[16,64], index: 1, kind: output, shape index: {}]  }
   0x1   :  { %v138_v0 = vld [vmem:[%s225_s0 + $0xe] sm:$0x3]  ;;  %v139_v1 = vld [vmem:[%s225_s0 + $0xc] sm:$0x3]  ;;  %v140_v2 = vld [vmem:[%s225_s0 + $0xa] sm:$0x3] }
   0x2   :  { %48 = vst [vmem:[#allocation0 + $0x38] sm:$0x3] %v138_v0  ;;  %53 = vst [vmem:[#allocation0 + $0x30] sm:$0x3] %v139_v1  ;;  %v141_v3 = vld [vmem:[%s225_s0 + $0x8] sm:$0x3] }
   0x3   :  { %58 = vst [vmem:[#allocation0 + $0x28] sm:$0x3] %v140_v2  ;;  %v142_v4 = vld [vmem:[%s225_s0 + $0x6] sm:$0x3]  ;;  %v143_v5 = vld [vmem:[%s225_s0 + $0x4] sm:$0x3] }
   0x4   :  { %63 = vst [vmem:[#allocation0 + $0x20] sm:$0x3] %v141_v3  ;;  %68 = vst [vmem:[#allocation0 + $0x18] sm:$0x3] %v142_v4  ;;  %v144_v6 = vld [vmem:[%s225_s0 + $0x2] sm:$0x3] }
   0x5   :  { %73 = vst [vmem:[#allocation0 + $0x10] sm:$0x3] %v143_v5  ;;  %v78_v7 = vld [vmem:[%s225_s0] sm:$0x3]  ;;  %77 = vst [vmem:[#allocation0 + $0x8] sm:$0x3] %v144_v6 }
   0x6   :  { %79 = vst [vmem:[#allocation0] sm:$0x3] %v78_v7  ;;  %v130_v8 = vld [vmem:[%s225_s0 + $0x1e] sm:$0x3]  ;;  %v131_v9 = vld [vmem:[%s225_s0 + $0x1c] sm:$0x3] }
   0x7   :  { %v132_v10 = vld [vmem:[%s225_s0 + $0x1a] sm:$0x3]  ;;  %8 = vst [vmem:[#allocation0 + $0x78] sm:$0x3] %v130_v8  ;;  %13 = vst [vmem:[#allocation0 + $0x70] sm:$0x3] %v131_v9 }
   0x8   :  { %18 = vst [vmem:[#allocation0 + $0x68] sm:$0x3] %v132_v10  ;;  %v133_v11 = vld [vmem:[%s225_s0 + $0x18] sm:$0x3]  ;;  %v134_v12 = vld [vmem:[%s225_s0 + $0x16] sm:$0x3] }
   0x9   :  { %v135_v13 = vld [vmem:[%s225_s0 + $0x14] sm:$0x3]  ;;  %23 = vst [vmem:[#allocation0 + $0x60] sm:$0x3] %v133_v11  ;;  %28 = vst [vmem:[#allocation0 + $0x58] sm:$0x3] %v134_v12 }
   0xa   :  { %33 = vst [vmem:[#allocation0 + $0x50] sm:$0x3] %v135_v13  ;;  %v136_v14 = vld [vmem:[%s225_s0 + $0x12] sm:$0x3]  ;;  %v137_v15 = vld [vmem:[%s225_s0 + $0x10] sm:$0x3] }
   0xb   :  { %38 = vst [vmem:[#allocation0 + $0x48] sm:$0x3] %v136_v14  ;;  %43 = vst [vmem:[#allocation0 + $0x40] sm:$0x3] %v137_v15  ;;  %s148_s0 = smov 32  }
   0xc   :  { %v98_v16 = vld [vmem:[#allocation0 + $0x1] ss:$8 sm:$0xf0]   ;;  %v81_v17 = vld [vmem:[#allocation0] ss:$8 sm:$0xf0]  }
   0xd   :  { %v96_v18 = vld [vmem:[#allocation0 + $0x1] ss:$8 sm:$0xf]   ;;  %v80_v19 = vld [vmem:[#allocation0] ss:$8 sm:$0xf]  }
   0xe   :  { %v100_v20 = vsel %vm82_vm0, %v98_v16, %v96_v18  ;;  %v83_v21 = vsel %vm82_vm0, %v81_v17, %v80_v19 }
   0xf   :  { %101 = vrot.lane.b32.xlu0 %v100_v20, %s148_s0  ;;  %85 = vst.msk [vmem:[%s226_s1] sm:$0xff] %vm84_vm1, %v83_v21  }
  0x10   :  { %v108_v22 = vld [vmem:[#allocation0 + $0x41] ss:$8 sm:$0xf0]   ;;  %v89_v23 = vld [vmem:[#allocation0 + $0x40] ss:$8 sm:$0xf0]  }
  0x12   :  { %v106_v24 = vld [vmem:[#allocation0 + $0x41] ss:$8 sm:$0xf]   ;;  %v87_v25 = vld [vmem:[#allocation0 + $0x40] ss:$8 sm:$0xf]  }
  0x13   :  { %v110_v26 = vsel %vm82_vm0, %v108_v22, %v106_v24  ;;  %v91_v27 = vsel %vm82_vm0, %v89_v23, %v87_v25 }
  0x14   :  { %145 = vst.msk [vmem:[%s226_s1 + $0x8] sm:$0xff] %vm84_vm1, %v91_v27   ;;  %111 = vrot.lane.b32.xlu0 %v110_v26, %s148_s0 }
  0x81   :  { %v102_v28 = vpop.permute.xlu0 %101  }
  0x82   :  { %104 = vst.msk [vmem:[%s226_s1] sm:$0xff] %vm103_vm2, %v102_v28  }
  0x86   :  { %v112_v29 = vpop.permute.xlu0 %111  }
  0x87   :  { %146 = vst.msk [vmem:[%s226_s1 + $0x8] sm:$0xff] %vm103_vm2, %v112_v29  }

// kernel: positional_encoding_forward.1
= control target key start
LH: loop header
LB: loop body
LE: loop exit
PB: predicated region body
PF: predicated region fallthrough
CT: control target
= control target key end

     0   :  { %vm17_vm0 = vcmask 523264   ;;  %s57_s0 = inlined_call_operand.vmem [shape: f32[16,64], index: 0, kind: input, shape index: {}]   ;;  %s58_s1 = inlined_call_operand.vmem [shape: f32[16,64], index: 1, kind: input, shape index: {}]   ;;  %s59_s2 = inlined_call_operand.vmem [shape: f32[16,64], index: 2, kind: output, shape index: {}]  }
   0x1   :  { %v11_v0 = vld [vmem:[%s57_s0] sm:$0xff]  ;;  %v12_v2 = vld [vmem:[%s57_s0 + $0x8] sm:$0xff] }
   0x2   :  { %v13_v1 = vld [vmem:[%s58_s1] sm:$0xff]  ;;  %v14_v4 = vld [vmem:[%s58_s1 + $0x8] sm:$0xff] }
   0x3   :  { %v15_v3 = vadd.f32 %v13_v1, %v11_v0  ;;  %v16_v5 = vadd.f32 %v14_v4, %v12_v2 }
   0x5   :  { %18 = vst.msk [vmem:[%s59_s2] sm:$0xff] %vm17_vm0, %v15_v3  ;;  %19 = vst.msk [vmem:[%s59_s2 + $0x8] sm:$0xff] %vm17_vm0, %v16_v5 }

</bundles_post_ra>
